<compile_context>
chip_gen: v5e
topology: v5e:2x2
jax: 0.10.0
libtpu: 0.0.40
codegen_flags: <defaults>
</compile_context>

<pallas_src>
import functools

import jax
import jax.numpy as jnp
from jax.experimental import pallas as pl
from jax.experimental.pallas import tpu as pltpu


def _conv_block_kernel(k_ref, x_ref, o_ref, pad_ref, *, kh, kw, H, W, ph, pw):
    """One grid step: TB planes, zero-padded in VMEM, fully unrolled taps.

    k_ref:   (kh, kw)       f32, SMEM (read as scalars)
    x_ref:   (TB, H, W)     input block, VMEM
    o_ref:   (TB, H, W)     output block, VMEM
    pad_ref: (TB, Hp, Wp)   f32 VMEM scratch (zero-padded working copy)
    """
    TB = o_ref.shape[0]

    # In-kernel zero padding: zero the scratch, then drop the block into the
    # interior. (Re-zeroed every step: on v7x the parallel grid is sharded
    # across 2 TensorCores, each with its own scratch, so a "first step only"
    # init would leave the second core's halo uninitialized.)
    pad_ref[...] = jnp.zeros_like(pad_ref)
    pad_ref[:, pl.ds(ph, H), pl.ds(pw, W)] = x_ref[...].astype(jnp.float32)

    acc0 = jnp.zeros((TB, H, W), jnp.float32)
    acc1 = jnp.zeros((TB, H, W), jnp.float32)
    tap = 0
    for v in range(kw):                              # unrolled: kh*kw is tiny
        # One lane-shifted view per column offset, reused for all row offsets.
        xv = pad_ref[:, :, pl.ds(v, W)]              # (TB, Hp, W), f32
        for u in range(kh):
            term = k_ref[u, v] * xv[:, u:u + H, :]   # sublane shift only
            if tap % 2 == 0:
                acc0 = acc0 + term
            else:
                acc1 = acc1 + term
            tap += 1
    o_ref[...] = (acc0 + acc1).astype(o_ref.dtype)


def custom_kernel_pallas(image, kernel):
    """JAX/Pallas equivalent of jac custom_kernel(image, k, border_mode='zero').

    image: 2D (H, W), 3D (C, H, W) or 4D (N, C, H, W) float array.
    kernel: 2D (kh, kw) float32 array with odd kh, kw.
    Returns an array with the same shape/dtype as `image`.
    """
    kernel = jnp.asarray(kernel, jnp.float32)
    assert kernel.ndim == 2, "only the 2-D (single) kernel case is implemented"
    kh, kw = kernel.shape
    assert kh % 2 == 1 and kw % 2 == 1
    ph, pw = kh // 2, kw // 2

    orig_shape = image.shape
    orig_dtype = image.dtype
    if image.ndim not in (2, 3, 4):
        raise ValueError(f"Unsupported image dim: {image.ndim}.")
    x4 = image
    for _ in range(4 - image.ndim):
        x4 = x4[None]
    N, C, H, W = x4.shape
    NC = N * C
    x3 = x4.reshape(NC, H, W)          # no host-side pad; padding is in-kernel

    Hp, Wp = H + kh - 1, W + kw - 1
    itemsize = jnp.dtype(orig_dtype).itemsize

    # --- pick how many planes per grid step from a VMEM budget ---------------
    per_plane = (2 * H * W * itemsize          # double-buffered input block
                 + 2 * H * W * itemsize        # double-buffered output block
                 + Hp * Wp * 4                 # padded f32 scratch
                 + 2 * H * W * 4               # two f32 accumulators
                 + 2 * Hp * W * 4)             # hoisted per-column tap views
    budget = 24 * 1024 * 1024                  # leave headroom under the limit
    tb_target = max(1, min(budget // per_plane, NC))
    if NC >= 2:
        # keep >=2 grid steps so v7x's two TensorCores both get work
        tb_target = min(tb_target, max(1, NC // 2))
    TB = 1
    for d in range(1, int(tb_target) + 1):     # largest divisor of NC <= target
        if NC % d == 0:
            TB = d
    grid = (NC // TB,)
    # TODO(synk): for planes too large to fit whole in VMEM (multi-MP images,
    # esp. on v7x's 64 MiB), strip-tile along H with a ph-row halo.

    kern = functools.partial(_conv_block_kernel,
                             kh=kh, kw=kw, H=H, W=W, ph=ph, pw=pw)

    out = pl.pallas_call(
        kern,
        out_shape=jax.ShapeDtypeStruct((NC, H, W), orig_dtype),
        grid=grid,
        in_specs=[
            pl.BlockSpec(memory_space=pltpu.MemorySpace.SMEM),   # kernel weights
            pl.BlockSpec((TB, H, W), lambda b: (b, 0, 0)),       # input planes
        ],
        out_specs=pl.BlockSpec((TB, H, W), lambda b: (b, 0, 0)),
        scratch_shapes=[pltpu.VMEM((TB, Hp, Wp), jnp.float32)],
        compiler_params=pltpu.CompilerParams(
            dimension_semantics=("parallel",),
            vmem_limit_bytes=48 * 1024 * 1024),
    )(kernel, x3)

    return out.reshape(orig_shape)


# TODO(synk): MaxPoolingKernelDef branch (F.max_pool2d path) not implemented;
# only the tensor-kernel (depthwise same-conv) branch is translated.


def _reference(image, kernel):
    """Pure-JAX reference matching F.conv2d on the (N*C, 1, H, W) view."""
    kh, kw = kernel.shape
    x4 = image
    for _ in range(4 - image.ndim):
        x4 = x4[None]
    N, C, H, W = x4.shape
    lhs = x4.reshape(N * C, 1, H, W).astype(jnp.float32)
    rhs = kernel.reshape(1, 1, kh, kw).astype(jnp.float32)
    out = jax.lax.conv_general_dilated(
        lhs, rhs, window_strides=(1, 1),
        padding=((kh // 2, kh // 2), (kw // 2, kw // 2)),
        dimension_numbers=("NCHW", "OIHW", "NCHW"))
    return out.reshape(image.shape).astype(image.dtype)


if __name__ == "__main__":
    key = jax.random.PRNGKey(0)
    # deterministic 3x3 "kernel" buffer (separable Gaussian-like blur)
    k1d = jnp.array([1.0, 2.0, 1.0], jnp.float32)
    kernel = jnp.outer(k1d, k1d)
    kernel = kernel / jnp.sum(kernel)

    x = jax.random.normal(key, (2, 4, 16, 16), dtype=jnp.float32)

    y = custom_kernel_pallas(x, kernel)
    y = jax.block_until_ready(y)

    y_ref = _reference(x, kernel)
    assert y.shape == x.shape and y.dtype == x.dtype
    assert jnp.allclose(y, y_ref, atol=1e-5, rtol=1e-5)

    print("KERNEL_OK")
</pallas_src>

<mosaic_0001>
module attributes {stable_mosaic.version = 11 : i64} {
  func.func @_conv_block_kernel(%arg0: i32, %arg1: memref<3x3xf32, #tpu.memory_space<smem>>, %arg2: memref<4x16x16xf32, #tpu.memory_space<vmem>>, %arg3: memref<4x16x16xf32, #tpu.memory_space<vmem>>, %arg4: memref<4x18x18xf32, #tpu.memory_space<vmem>>) attributes {dimension_semantics = [#tpu.dimension_semantics<parallel>], iteration_bounds = array<i64: 2>, scalar_prefetch = 0 : i64, scratch_operands = 1 : i64, tpu.core_type = #tpu.core_type<tc>, window_params = [{transform_indices = @transform_0, window_bounds = array<i64: 3, 3>}, {transform_indices = @transform_1, window_bounds = array<i64: 4, 16, 16>}, {transform_indices = @transform_2, window_bounds = array<i64: 4, 16, 16>}]} {
    %cst = arith.constant 0.000000e+00 : f32
    %0 = vector.broadcast %cst : f32 to vector<4x18x18xf32>
    %c0 = arith.constant 0 : index
    %c0_0 = arith.constant 0 : index
    %c0_1 = arith.constant 0 : index
    %1 = vector.load %arg4[%c0, %c0_0, %c0_1] : memref<4x18x18xf32, #tpu.memory_space<vmem>>, vector<4x18x18xf32>
    tpu.vector_store %arg4[%c0, %c0_0, %c0_1], %0 {strides = array<i32>} : memref<4x18x18xf32, #tpu.memory_space<vmem>>, vector<4x18x18xf32>,
    %c0_2 = arith.constant 0 : index
    %c0_3 = arith.constant 0 : index
    %c0_4 = arith.constant 0 : index
    %2 = vector.load %arg2[%c0_2, %c0_3, %c0_4] : memref<4x16x16xf32, #tpu.memory_space<vmem>>, vector<4x16x16xf32>
    %c0_5 = arith.constant 0 : index
    %c1 = arith.constant 1 : index
    %c1_6 = arith.constant 1 : index
    %3 = vector.load %arg4[%c0_5, %c1, %c1_6] : memref<4x18x18xf32, #tpu.memory_space<vmem>>, vector<4x16x16xf32>
    tpu.vector_store %arg4[%c0_5, %c1, %c1_6], %2 {strides = array<i32>} : memref<4x18x18xf32, #tpu.memory_space<vmem>>, vector<4x16x16xf32>,
    %cst_7 = arith.constant 0.000000e+00 : f32
    %4 = vector.broadcast %cst_7 : f32 to vector<4x16x16xf32>
    %cst_8 = arith.constant 0.000000e+00 : f32
    %5 = vector.broadcast %cst_8 : f32 to vector<4x16x16xf32>
    %c0_9 = arith.constant 0 : index
    %c0_10 = arith.constant 0 : index
    %c0_11 = arith.constant 0 : index
    %6 = vector.load %arg4[%c0_9, %c0_10, %c0_11] : memref<4x18x18xf32, #tpu.memory_space<vmem>>, vector<4x18x16xf32>
    %c0_12 = arith.constant 0 : index
    %c0_13 = arith.constant 0 : index
    %7 = memref.load %arg1[%c0_12, %c0_13] : memref<3x3xf32, #tpu.memory_space<smem>>
    %8 = vector.extract_strided_slice %6 {offsets = [0, 0, 0], sizes = [4, 16, 16], strides = [1, 1, 1]} : vector<4x18x16xf32> to vector<4x16x16xf32>
    %9 = vector.broadcast %7 : f32 to vector<4x16x16xf32>
    %10 = arith.mulf %9, %8 : vector<4x16x16xf32>
    %11 = arith.addf %4, %10 : vector<4x16x16xf32>
    %c1_14 = arith.constant 1 : index
    %c0_15 = arith.constant 0 : index
    %12 = memref.load %arg1[%c1_14, %c0_15] : memref<3x3xf32, #tpu.memory_space<smem>>
    %13 = vector.extract_strided_slice %6 {offsets = [0, 1, 0], sizes = [4, 16, 16], strides = [1, 1, 1]} : vector<4x18x16xf32> to vector<4x16x16xf32>
    %14 = vector.broadcast %12 : f32 to vector<4x16x16xf32>
    %15 = arith.mulf %14, %13 : vector<4x16x16xf32>
    %16 = arith.addf %5, %15 : vector<4x16x16xf32>
    %c2 = arith.constant 2 : index
    %c0_16 = arith.constant 0 : index
    %17 = memref.load %arg1[%c2, %c0_16] : memref<3x3xf32, #tpu.memory_space<smem>>
    %18 = vector.extract_strided_slice %6 {offsets = [0, 2, 0], sizes = [4, 16, 16], strides = [1, 1, 1]} : vector<4x18x16xf32> to vector<4x16x16xf32>
    %19 = vector.broadcast %17 : f32 to vector<4x16x16xf32>
    %20 = arith.mulf %19, %18 : vector<4x16x16xf32>
    %21 = arith.addf %11, %20 : vector<4x16x16xf32>
    %c0_17 = arith.constant 0 : index
    %c0_18 = arith.constant 0 : index
    %c1_19 = arith.constant 1 : index
    %22 = vector.load %arg4[%c0_17, %c0_18, %c1_19] : memref<4x18x18xf32, #tpu.memory_space<vmem>>, vector<4x18x16xf32>
    %c0_20 = arith.constant 0 : index
    %c1_21 = arith.constant 1 : index
    %23 = memref.load %arg1[%c0_20, %c1_21] : memref<3x3xf32, #tpu.memory_space<smem>>
    %24 = vector.extract_strided_slice %22 {offsets = [0, 0, 0], sizes = [4, 16, 16], strides = [1, 1, 1]} : vector<4x18x16xf32> to vector<4x16x16xf32>
    %25 = vector.broadcast %23 : f32 to vector<4x16x16xf32>
    %26 = arith.mulf %25, %24 : vector<4x16x16xf32>
    %27 = arith.addf %16, %26 : vector<4x16x16xf32>
    %c1_22 = arith.constant 1 : index
    %c1_23 = arith.constant 1 : index
    %28 = memref.load %arg1[%c1_22, %c1_23] : memref<3x3xf32, #tpu.memory_space<smem>>
    %29 = vector.extract_strided_slice %22 {offsets = [0, 1, 0], sizes = [4, 16, 16], strides = [1, 1, 1]} : vector<4x18x16xf32> to vector<4x16x16xf32>
    %30 = vector.broadcast %28 : f32 to vector<4x16x16xf32>
    %31 = arith.mulf %30, %29 : vector<4x16x16xf32>
    %32 = arith.addf %21, %31 : vector<4x16x16xf32>
    %c2_24 = arith.constant 2 : index
    %c1_25 = arith.constant 1 : index
    %33 = memref.load %arg1[%c2_24, %c1_25] : memref<3x3xf32, #tpu.memory_space<smem>>
    %34 = vector.extract_strided_slice %22 {offsets = [0, 2, 0], sizes = [4, 16, 16], strides = [1, 1, 1]} : vector<4x18x16xf32> to vector<4x16x16xf32>
    %35 = vector.broadcast %33 : f32 to vector<4x16x16xf32>
    %36 = arith.mulf %35, %34 : vector<4x16x16xf32>
    %37 = arith.addf %27, %36 : vector<4x16x16xf32>
    %c0_26 = arith.constant 0 : index
    %c0_27 = arith.constant 0 : index
    %c2_28 = arith.constant 2 : index
    %38 = vector.load %arg4[%c0_26, %c0_27, %c2_28] : memref<4x18x18xf32, #tpu.memory_space<vmem>>, vector<4x18x16xf32>
    %c0_29 = arith.constant 0 : index
    %c2_30 = arith.constant 2 : index
    %39 = memref.load %arg1[%c0_29, %c2_30] : memref<3x3xf32, #tpu.memory_space<smem>>
    %40 = vector.extract_strided_slice %38 {offsets = [0, 0, 0], sizes = [4, 16, 16], strides = [1, 1, 1]} : vector<4x18x16xf32> to vector<4x16x16xf32>
    %41 = vector.broadcast %39 : f32 to vector<4x16x16xf32>
    %42 = arith.mulf %41, %40 : vector<4x16x16xf32>
    %43 = arith.addf %32, %42 : vector<4x16x16xf32>
    %c1_31 = arith.constant 1 : index
    %c2_32 = arith.constant 2 : index
    %44 = memref.load %arg1[%c1_31, %c2_32] : memref<3x3xf32, #tpu.memory_space<smem>>
    %45 = vector.extract_strided_slice %38 {offsets = [0, 1, 0], sizes = [4, 16, 16], strides = [1, 1, 1]} : vector<4x18x16xf32> to vector<4x16x16xf32>
    %46 = vector.broadcast %44 : f32 to vector<4x16x16xf32>
    %47 = arith.mulf %46, %45 : vector<4x16x16xf32>
    %48 = arith.addf %37, %47 : vector<4x16x16xf32>
    %c2_33 = arith.constant 2 : index
    %c2_34 = arith.constant 2 : index
    %49 = memref.load %arg1[%c2_33, %c2_34] : memref<3x3xf32, #tpu.memory_space<smem>>
    %50 = vector.extract_strided_slice %38 {offsets = [0, 2, 0], sizes = [4, 16, 16], strides = [1, 1, 1]} : vector<4x18x16xf32> to vector<4x16x16xf32>
    %51 = vector.broadcast %49 : f32 to vector<4x16x16xf32>
    %52 = arith.mulf %51, %50 : vector<4x16x16xf32>
    %53 = arith.addf %43, %52 : vector<4x16x16xf32>
    %54 = arith.addf %53, %48 : vector<4x16x16xf32>
    %c0_35 = arith.constant 0 : index
    %c0_36 = arith.constant 0 : index
    %c0_37 = arith.constant 0 : index
    %55 = vector.load %arg3[%c0_35, %c0_36, %c0_37] : memref<4x16x16xf32, #tpu.memory_space<vmem>>, vector<4x16x16xf32>
    tpu.vector_store %arg3[%c0_35, %c0_36, %c0_37], %54 {strides = array<i32>} : memref<4x16x16xf32, #tpu.memory_space<vmem>>, vector<4x16x16xf32>,
    return
  }
  func.func @transform_0(%arg0: i32) -> (i32, i32) {
    %c0_i32 = arith.constant 0 : i32
    %c0_i32_0 = arith.constant 0 : i32
    %c0_i32_1 = arith.constant 0 : i32
    return %c0_i32, %c0_i32_0 : i32, i32
  }
  func.func @transform_1(%arg0: i32) -> (i32, i32, i32) {
    %c0_i32 = arith.constant 0 : i32
    %c0_i32_0 = arith.constant 0 : i32
    %c0_i32_1 = arith.constant 0 : i32
    return %arg0, %c0_i32, %c0_i32_0 : i32, i32, i32
  }
  func.func @transform_2(%arg0: i32) -> (i32, i32, i32) {
    %c0_i32 = arith.constant 0 : i32
    %c0_i32_0 = arith.constant 0 : i32
    %c0_i32_1 = arith.constant 0 : i32
    return %arg0, %c0_i32, %c0_i32_0 : i32, i32, i32
  }
}

</mosaic_0001>

<bundles_post_ra>
// kernel: tpu_custom_call.1
= control target key start
LH: loop header
LB: loop body
LE: loop exit
PB: predicated region body
PF: predicated region fallthrough
CT: control target
= control target key end

     0   :  { %7 = vsyncpa [#allocation6], 0  ;;  %s1895_s0 = inlined_call_operand.hbm [shape: f32[3,3], index: 0, kind: input, shape index: {}]   ;;  %s1896_s1 = inlined_call_operand.hbm [shape: f32[8,16,16], index: 1, kind: input, shape index: {}]   ;;  %s1897_s2 = inlined_call_operand.hbm [shape: f32[8,16,16], index: 2, kind: output, shape index: {}]  }
   0x1   :  { %8 = vsyncpa [#allocation4], 0 }
   0x2   :  { %10 = vsyncpa [#allocation4 + $0x1], 0 }
   0x3   :  { %11 = vsyncpa [#allocation5], 0 }
   0x4   :  { %13 = vsyncpa [#allocation5 + $0x1], 0  ;;  %s1212_s9 = smov 0   ;;  %s1214_s10 = smov 0  }
   0x5   :  { %s1216_s11 = smov 0   ;;  %s1218_s12 = smov 0  }
   0x6 LB: > { %s1233_s13 = sadd.s32 4294967295, %s1186_s12   ;;  %s976_s14 = sadd.s32 4294967294, %s1186_s12   ;;  %s1186_s12 = sphi %s1218_s12, %s1920_s12   ;;  %s1182_s11 = sphi %s1216_s11, %s1919_s11   ;;  %s1178_s10 = sphi %s1214_s10, %s1918_s10   ;;  %s1174_s9 = sphi %s1212_s9, %s1917_s9  }
   0x7   : > { %s1237_s15 = sadd.s32 1, %s1186_s12   ;;  %s47_s16 = sadd.s32 1, %s1182_s11 }
   0x8   : > { %s44_s17 = ssub.s32 %s1186_s12, %s1237_s15  ;;  %p54_p0 = scmp.ne.s32.totalorder %s1182_s11, %s1178_s10 }
   0x9   : > { %p45_p1 = scmp.eq.s32.totalorder %s44_s17, 0  ;;  %p55_p2 = scmp.eq.s32.totalorder %s1186_s12, 0 }
   0xa   : > { %p60_p3 = scmp.ne.s32.totalorder %s1178_s10, %s1174_s9  ;;  %p61_p4 = scmp.eq.s32.totalorder %s1233_s13, 0 }
   0xb   : > { %s1249_s18 = scalar_select %p45_p1, %s1182_s11, %s47_s16  }
   0xc   : > { %p1251_p5 = por %p55_p2, %p54_p0  ;;  %p1257_p6 = por %p61_p4, %p60_p3 }
   0xd   : > { %p84_p7 = scmp.eq.s32.totalorder %s1233_s13, 1  ;;  %p90_p8 = scmp.eq.s32.totalorder %s976_s14, 1 }
   0xe   : > { %p977_p9 = scmp.ge.s32.totalorder %s1186_s12, 1  ;;  %p97_p10 = scmp.lt.s32.totalorder %s1186_s12, 3 }
   0xf   : > { %p1264_p11 = por %p84_p7, %p54_p0  ;;  %p1268_p12 = por %p90_p8, %p60_p3 }
  0x10   : > { %p1272_p13 = pnand %p977_p9, %p97_p10  ;;  %s109_s26 = sshll.u32 %s1895_s0, 4  ;;  %s110_s26 = int_to_ptr.hbm [resolvable:$true] %s109_s26 }
  0x11   : > { %p1027_p2 = scmp.lt.s32.totalorder %s1186_s12, 2  ;;  %s120_s27 = sand.u32 1, %s1182_s11  }
  0x12   : > { %p1014_p1 = pneg %p1272_p13  ;;  %s980_s29 = sshll.u32 %s120_s27, 6 }
  0x13   : > { %p1288_p3 = pnand %p1027_p2, %p1251_p5  ;;  %s1188_s30 = smov [#allocation3]  }
  0x14   : > { %p1015_p7 = pnand %p1014_p1, %p61_p4  ;;  %s1003_s3 = sshll.u32 %s1186_s12, 6 }
  0x15   : > { %s124_s4 = scalar_lea.vmem [#allocation7], %s980_s29  ;;  %s130_s8 = scalar_lea.hbm %s1896_s1, %s1003_s3 }
  0x16   : > { %1017 = dma.hbm_to_smem (!%p1015_p7), %s110_s26, 64, %s1188_s30, [#allocation6]  }
  0x17   : > { %s133_s5 = sshll.u32 %s124_s4, 4  ;;  %s131_s14 = sshll.u32 %s130_s8, 4  ;;  %s134_s5 = int_to_ptr.vmem [resolvable:$true] %s133_s5  ;;  %s132_s14 = int_to_ptr.hbm [resolvable:$true] %s131_s14 }
  0x18   : > { %s121_s16 = scalar_lea.sflag [#allocation4], %s120_s27  ;;  %s1086_s17 = sshra.s32 %s132_s14, 4  ;;  %s1087_s17 = int_to_ptr.hbm [resolvable:$true] %s1086_s17 }
  0x19   : > { %s1088_s19 = scalar_lea.hbm %s1087_s17, 64  ;;  %p1090_p8 = pneg %p1288_p3 }
  0x1a   : > { %p1089_p5 = scmp.ne.s32.totalorder %s1087_s17, %s1088_s19  ;;  %s1093_s26 = scalar_lea.hbm %s1896_s1, 128 }
  0x1b   : > { %p1094_p1 = scmp.lt.s32.totalorder %s1087_s17, %s1896_s1  ;;  %p1095_p2 = scmp.lt.s32.totalorder %s1093_s26, %s1088_s19 }
  0x1c   : > { %p1091_p9 = pnand %p1090_p8, %p1089_p5 }
  0x1d   : > { %p1096_p7 = por %p1095_p2, %p1094_p1 }
  0x1e   : > { %p1092_p10 = pneg %p1091_p9 }
  0x20   : > { %p1097_p0 = pnand %p1096_p7, %p1092_p10 }
  0x22   : > { %1100 = shalt.err (!%p1097_p0)
}
  0x23   : > { %s1189_s27 = smov 128   ;;  %s1190_s3 = smov 8  }
  0x24   : > { %1021 = dma.hbm_to_vmem [thread:$0]  (!%p1288_p3), %s132_s14, 1024, %s134_s5, %s121_s16, %s1189_s27, %s1189_s27, %s1190_s3  }
  0x25   : > { %145 = sbr.rel (%p1272_p13) target bundleno = 451 (0x1c3), region = 28 }
  0x2a   : > { %1161 = dma.done.wait (%p61_p4), [#allocation6], 64  }
  0x2b   : > { %1163 = vsyncadd (%p61_p4), [#allocation6], 4294967232  ;;  %s1313_s4 = sand.u32 1, %s1178_s10  }
  0x2c   : > { %s986_s6 = sshll.u32 %s1313_s4, 6  ;;  %s153_s7 = scalar_lea.sflag [#allocation4], %s1313_s4 }
  0x2d   : > { %s156_s28 = scalar_lea.vmem [#allocation7], %s986_s6 }
  0x2e   : > { %1165 = dma.done.wait (%p1257_p6), %s153_s7, 1024  }
  0x2f   : > { %1167 = vsyncadd (%p1257_p6), %s153_s7, 4294966272 }
  0x30   : > { %162 = sfence }
  0x31   : > { %v197_v0 = vld [vmem:[%s156_s28 + $0x10] sm:$0xff]  ;;  %v195_v1 = vld [vmem:[%s156_s28] sm:$0xff]  ;;  %s1191_s23 = smov 1   ;;  %v198_v3 = vld [vmem:[%s156_s28 + $0x18] sm:$0xff]  ;;  %vm181_vm0 = vcmask 146432   ;;  %v1192_v8 = vmov 0.0  }
  0x32   : > { %215 = vrot.lane.b32.xlu1 %v197_v0, %s1191_s23  ;;  %211 = vrot.lane.b32.xlu0 %v195_v1, %s1191_s23  ;;  %v199_v2 = vld [vmem:[%s156_s28 + $0x20] sm:$0xff]  ;;  %v196_v4 = vld [vmem:[%s156_s28 + $0x8] sm:$0xff]  ;;  %189 = vst.msk [vmem:[#allocation2 + $0x30] sm:$0xff] %vm181_vm0, %v1192_v8  ;;  %vm184_vm1 = vcmask 140288   ;;  %vm235_vm2 = vcmask 138248   ;;  %s992_s20 = sld [smem:[#allocation3 + $0x101]] }
  0x33   : > { %219 = vrot.lane.b32.xlu2 %v199_v2, %s1191_s23  ;;  %v200_v5 = vld [vmem:[%s156_s28 + $0x28] sm:$0xff]  ;;  %v202_v6 = vld [vmem:[%s156_s28 + $0x38] sm:$0xff]  ;;  %v201_v7 = vld [vmem:[%s156_s28 + $0x30] sm:$0xff]  ;;  %190 = vst.msk [vmem:[#allocation2 + $0x38] sm:$0xff] %vm181_vm0, %v1192_v8  ;;  %s994_s5 = sld [smem:[#allocation3 + $0x82]]  ;;  %vm468_vm3 = vcmask 1046528  }
  0x34   : > { %182 = vst.msk [vmem:[#allocation2] sm:$0xff] %vm181_vm0, %v1192_v8  ;;  %s995_s8 = sld [smem:[#allocation3 + $0x102]]  ;;  %vm326_vm4 = vcmask 1045504   ;;  %s1193_s19 = smov 126   ;;  %vm381_vm5 = vcmask 1040384   ;;  %vm865_vm6 = vcmask 130048  }
  0x35   : > { %183 = vst.msk [vmem:[#allocation2 + $0x8] sm:$0xff] %vm181_vm0, %v1192_v8  ;;  %s989_s14 = sld [smem:[#allocation3 + $0x100]]  ;;  %s1194_s25 = smov 127  }
  0x36   : > { %186 = vst.msk [vmem:[#allocation2 + $0x18] sm:$0xff] %vm181_vm0, %v1192_v8  ;;  %s256_s16 = sld [smem:[#allocation3]]  ;;  %s1828_s30 = scalar_lea.vmem [#allocation8], %s986_s6 }
  0x37   : > { %187 = vst.msk [vmem:[#allocation2 + $0x20] sm:$0xff] %vm181_vm0, %v1192_v8  ;;  %s993_s17 = sld [smem:[#allocation3 + $0x2]]  ;;  %s1005_s27 = sshll.u32 %s1233_s13, 6 }
  0x38   : > { %192 = vst.msk [vmem:[#allocation2 + $0x48] sm:$0xff] %vm181_vm0, %v1192_v8  ;;  %v1324_v10 = vstv %s992_s20  ;;  %s990_s24 = sld [smem:[#allocation3 + $0x1]]  ;;  %s887_s7 = scalar_lea.hbm %s1897_s2, %s1005_s27 }
  0x39   : > { %193 = vst.msk [vmem:[#allocation2 + $0x50] sm:$0xff] %vm181_vm0, %v1192_v8  ;;  %v1326_v11 = vstv %s994_s5  ;;  %s991_s26 = sld [smem:[#allocation3 + $0x81]]  ;;  %s888_s13 = sshll.u32 %s1828_s30, 4  ;;  %s889_s13 = int_to_ptr.vmem [resolvable:$true] %s888_s13 }
  0x3a   : > { %217 = vrot.lane.b32.xlu1 %v198_v3, %s1191_s23  ;;  %213 = vrot.lane.b32.xlu0 %v196_v4, %s1191_s23  ;;  %191 = vst.msk [vmem:[#allocation2 + $0x40] sm:$0x3] %vm184_vm1, %v1192_v8  ;;  %v1337_v16 = vstv %s995_s8  ;;  %s988_s29 = sld [smem:[#allocation3 + $0x80]]  ;;  %s890_s28 = sshll.u32 %s887_s7, 4  ;;  %s891_s28 = int_to_ptr.hbm [resolvable:$true] %s890_s28 }
  0x3b   : > { %221 = vrot.lane.b32.xlu2 %v200_v5, %s1191_s23  ;;  %185 = vst.msk [vmem:[#allocation2 + $0x10] sm:$0x3] %vm184_vm1, %v1192_v8  ;;  %v1357_v25 = vstv %s989_s14  ;;  %s1130_s20 = sshra.s32 %s891_s28, 4  ;;  %s1131_s20 = int_to_ptr.hbm [resolvable:$true] %s1130_s20 }
  0x3c   : > { %188 = vst.msk [vmem:[#allocation2 + $0x28] sm:$0x3] %vm184_vm1, %v1192_v8  ;;  %v1362_v31 = vstv %s256_s16  ;;  %s1132_s5 = scalar_lea.hbm %s1131_s20, 64  ;;  %s1136_s16 = scalar_lea.hbm %s1897_s2, 128 }
  0x3d   : > { %194 = vst.msk [vmem:[#allocation2 + $0x58] sm:$0x3] %vm184_vm1, %v1192_v8  ;;  %v1398_v51 = vstv %s993_s17  ;;  %p1133_p4 = scmp.ne.s32.totalorder %s1131_s20, %s1132_s5  ;;  %p1137_p0 = scmp.lt.s32.totalorder %s1131_s20, %s1897_s2 }
  0x3e   : > { %p1138_p3 = scmp.lt.s32.totalorder %s1136_s16, %s1132_s5 }
  0x3f   : > { %p1134_p6 = pnand %p1133_p4, %p1264_p11 }
  0x40   : > { %p1139_p5 = por %p1138_p3, %p1137_p0 }
  0x41   : > { %p1135_p13 = pneg %p1134_p6 }
  0x42   : > { %225 = vrot.lane.b32.xlu1 %v202_v6, %s1191_s23  ;;  %223 = vrot.lane.b32.xlu0 %v201_v7, %s1191_s23  ;;  %s875_s23 = scalar_lea.sflag [#allocation5], %s1313_s4 }
  0x43   : > { %p1140_p8 = pnand %p1139_p5, %p1135_p13 }
  0x8d   : > { %v220_v9 = vpop.permute.xlu2 %219 }
  0x8e   : > { %240 = vst.msk [vmem:[#allocation2 + $0x31] sm:$0xff] %vm235_vm2, %v220_v9 }
  0x95   : > { %v222_v12 = vpop.permute.xlu2 %221  ;;  %v1328_v13 = vld [vmem:[#allocation2 + $0x30] sm:$0xff] }
  0x96   : > { %241 = vst.msk [vmem:[#allocation2 + $0x39] sm:$0xff] %vm235_vm2, %v222_v12  ;;  %v529_v14 = vmul.f32 %v1324_v10, %v1328_v13  ;;  %v1335_v15 = vmul.f32 %v1326_v11, %v1328_v13  ;;  %v747_v17 = vmul.f32 %v1337_v16, %v1328_v13  ;;  %v308_v43 = vmul.f32 %v1357_v25, %v1328_v13 }
  0x97   : > { %v262_v46 = vmul.f32 %v1362_v31, %v1328_v13 }
  0x98   : > { %v557_v21 = vrot.slane %v529_v14, 1  ;;  %v775_v27 = vrot.slane %v747_v17, 2  ;;  %v337_v47 = vrot.slane %v308_v43, 2 }
  0x9d   : > { %v1341_v18 = vld [vmem:[#allocation2 + $0x40] sm:$0x3]  ;;  %v1343_v19 = vld [vmem:[#allocation2 + $0x38] sm:$0xff] }
  0x9e   : > { %v1347_v20 = vmul.f32 %v1324_v10, %v1341_v18  ;;  %v530_v22 = vmul.f32 %v1324_v10, %v1343_v19  ;;  %v1353_v23 = vmul.f32 %v1326_v11, %v1343_v19  ;;  %v748_v24 = vmul.f32 %v1337_v16, %v1343_v19 }
  0x9f   : > { %v749_v30 = vmul.f32 %v1337_v16, %v1341_v18  ;;  %v309_v32 = vmul.f32 %v1357_v25, %v1343_v19  ;;  %v1376_v35 = vmul.f32 %v1326_v11, %v1341_v18  ;;  %v310_v40 = vmul.f32 %v1357_v25, %v1341_v18 }
  0xa0   : > { %v1899_v26 = vrot.slane %v1347_v20, 1  ;;  %v558_v28 = vrot.slane %v530_v22, 1  ;;  %v776_v29 = vrot.slane %v748_v24, 2  ;;  %v263_v42 = vmul.f32 %v1362_v31, %v1343_v19 }
  0xa1   : > { %v778_v39 = vrot.slane %v749_v30, 2  ;;  %v338_v41 = vrot.slane %v309_v32, 2  ;;  %v340_v45 = vrot.slane %v310_v40, 2  ;;  %v622_v1 = vmul.f32 %v1398_v51, %v1343_v19 }
  0xa2   : > { %v1367_v33 = vsel %vm468_vm3, %v557_v21, %v558_v28  ;;  %v1372_v34 = vsel %vm468_vm3, %v558_v28, %v1899_v26  ;;  %v1379_v38 = vsel %vm326_vm4, %v775_v27, %v776_v29 }
  0xa3   : > { %v1390_v44 = vsel %vm326_vm4, %v776_v29, %v778_v39  ;;  %v341_v48 = vsel %vm326_vm4, %v338_v41, %v340_v45  ;;  %v339_v50 = vsel %vm326_vm4, %v337_v47, %v338_v41  ;;  %v621_v45 = vmul.f32 %v1398_v51, %v1328_v13 }
  0xa4   : > { %v216_v36 = vpop.permute.xlu1 %215  ;;  %v212_v37 = vpop.permute.xlu0 %211  ;;  %1907 = vst [vmem:[#allocation12_spill] sm:$0xff] %v1390_v44  ;;  %v1395_v49 = vadd.f32 %v341_v48, %v263_v42  ;;  %v1400_v52 = vadd.f32 %v339_v50, %v262_v46 }
  0xa5   : > { %238 = vst.msk [vmem:[#allocation2 + $0x19] sm:$0xff] %vm235_vm2, %v216_v36 }
  0xa6   : > { %236 = vst.msk [vmem:[#allocation2 + $0x1] sm:$0xff] %vm235_vm2, %v212_v37 }
  0xa7   : > { %1908 = vst [vmem:[#allocation13_spill] sm:$0xff] %v1395_v49 }
  0xa8   : > { %1909 = vst [vmem:[#allocation14_spill] sm:$0xff] %v1400_v52 }
  0xac   : > { %v218_v53 = vpop.permute.xlu1 %217  ;;  %v214_v54 = vpop.permute.xlu0 %213  ;;  %v1402_v55 = vld [vmem:[#allocation2 + $0x18] sm:$0xff] }
  0xad   : > { %239 = vst.msk [vmem:[#allocation2 + $0x21] sm:$0xff] %vm235_vm2, %v218_v53  ;;  %v619_v56 = vmul.f32 %v1398_v51, %v1402_v55  ;;  %v1407_v57 = vld [vmem:[#allocation2] sm:$0xff]  ;;  %v526_v58 = vmul.f32 %v1324_v10, %v1402_v55  ;;  %v1418_v60 = vmul.f32 %v1326_v11, %v1402_v55  ;;  %v744_v48 = vmul.f32 %v1337_v16, %v1402_v55 }
  0xae   : > { %237 = vst.msk [vmem:[#allocation2 + $0x9] sm:$0xff] %vm235_vm2, %v214_v54  ;;  %v617_v59 = vmul.f32 %v1398_v51, %v1407_v57  ;;  %v523_v8 = vmul.f32 %v1324_v10, %v1407_v57  ;;  %v667_v30 = vmul.f32 %v1326_v11, %v1407_v57  ;;  %v741_v47 = vmul.f32 %v1337_v16, %v1407_v57 }
  0xaf   : > { %637 = vrot.lane.b32.xlu0 %v619_v56, %s1193_s19  ;;  %v552_v24 = vrot.slane %v526_v58, 1  ;;  %v1502_v56 = vstv %s990_s24 }
  0xb0   : > { %633 = vrot.lane.b32.xlu1 %v617_v59, %s1193_s19  ;;  %v547_v21 = vrot.slane %v523_v8, 1  ;;  %v302_v59 = vmul.f32 %v1357_v25, %v1407_v57  ;;  %v770_v8 = vrot.slane %v744_v48, 2 }
  0xb4   : > { %v226_v61 = vpop.permute.xlu1 %225  ;;  %v224_v62 = vpop.permute.xlu0 %223  ;;  %v1420_v63 = vld [vmem:[#allocation2 + $0x20] sm:$0xff]  ;;  %v1422_v0 = vld [vmem:[#allocation2 + $0x28] sm:$0x3] }
  0xb5   : > { %243 = vst.msk [vmem:[#allocation2 + $0x51] sm:$0xff] %vm235_vm2, %v226_v61  ;;  %v1427_v2 = vld [vmem:[#allocation2 + $0x8] sm:$0xff]  ;;  %v620_v3 = vmul.f32 %v1398_v51, %v1420_v63  ;;  %v1431_v4 = vld [vmem:[#allocation2 + $0x10] sm:$0x3]  ;;  %v1435_v5 = vmul.f32 %v1324_v10, %v1422_v0  ;;  %v527_v17 = vmul.f32 %v1324_v10, %v1420_v63  ;;  %v1454_v28 = vmul.f32 %v1326_v11, %v1420_v63 }
  0xb6   : > { %242 = vst.msk [vmem:[#allocation2 + $0x49] sm:$0xff] %vm235_vm2, %v224_v62  ;;  %v618_v6 = vmul.f32 %v1398_v51, %v1427_v2  ;;  %v525_v7 = vmul.f32 %v1324_v10, %v1431_v4  ;;  %v524_v9 = vmul.f32 %v1324_v10, %v1427_v2  ;;  %v1458_v29 = vmul.f32 %v1326_v11, %v1422_v0 }
  0xb7   : > { %643 = vrot.lane.b32.xlu0 %v622_v1, %s1193_s19  ;;  %v1900_v14 = vrot.slane %v1435_v5, 1  ;;  %v553_v27 = vrot.slane %v527_v17, 1  ;;  %v1910_v52 = vrot.slane %v1435_v5, 1 }
  0xb8   : > { %635 = vrot.lane.b32.xlu2 %v618_v6, %s1193_s19  ;;  %639 = vrot.lane.b32.xlu1 %v620_v3, %s1193_s19  ;;  %v550_v12 = vrot.slane %v525_v7, 1  ;;  %v548_v22 = vrot.slane %v524_v9, 1  ;;  %v305_v3 = vmul.f32 %v1357_v25, %v1402_v55  ;;  %v743_v6 = vmul.f32 %v1337_v16, %v1431_v4 }
  0xb9   : > { %v1476_v41 = vsel %vm468_vm3, %v552_v24, %v553_v27  ;;  %v1484_v43 = vsel %vm468_vm3, %v553_v27, %v1900_v14  ;;  %v765_v7 = vrot.slane %v741_v47, 2  ;;  %v668_v24 = vmul.f32 %v1326_v11, %v1427_v2 }
  0xba   : > { %v1465_v36 = vsel %vm468_vm3, %v547_v21, %v548_v22  ;;  %v1479_v42 = vsel %vm468_vm3, %v548_v22, %v550_v12  ;;  %v745_v22 = vmul.f32 %v1337_v16, %v1420_v63 }
  0xbc   : > { %v1462_v32 = vld [vmem:[#allocation2 + $0x58] sm:$0x3]  ;;  %v771_v47 = vrot.slane %v745_v22, 2 }
  0xbd   : > { %v1467_v37 = vld [vmem:[#allocation2 + $0x48] sm:$0xff]  ;;  %v1469_v39 = vld [vmem:[#allocation2 + $0x50] sm:$0xff]  ;;  %v1473_v40 = vmul.f32 %v1324_v10, %v1462_v32  ;;  %v1530_v21 = vmul.f32 %v1326_v11, %v1462_v32 }
  0xbe   : > { %v623_v46 = vmul.f32 %v1398_v51, %v1467_v37  ;;  %v532_v53 = vmul.f32 %v1324_v10, %v1467_v37  ;;  %v533_v54 = vmul.f32 %v1324_v10, %v1469_v39  ;;  %v1506_v58 = vmul.f32 %v1326_v11, %v1469_v39 }
  0xbf   : > { %691 = vrot.lane.b32.xlu0 %v667_v30, %s1193_s19  ;;  %v1898_v50 = vrot.slane %v1473_v40, 1  ;;  %v1512_v1 = vmul.f32 %v1326_v11, %v1467_v37  ;;  %v742_v10 = vmul.f32 %v1337_v16, %v1427_v2  ;;  %v768_v30 = vrot.slane %v743_v6, 2 }
  0xc0   : > { %641 = vrot.lane.b32.xlu2 %v621_v45, %s1193_s19  ;;  %645 = vrot.lane.b32.xlu1 %v623_v46, %s1193_s19  ;;  %v562_v61 = vrot.slane %v532_v53, 1  ;;  %v563_v62 = vrot.slane %v533_v54, 1  ;;  %v746_v45 = vmul.f32 %v1337_v16, %v1422_v0  ;;  %v624_v46 = vmul.f32 %v1398_v51, %v1469_v39 }
  0xc1   : > { %v766_v27 = vrot.slane %v742_v10, 2  ;;  %v751_v48 = vmul.f32 %v1337_v16, %v1469_v39  ;;  %v752_v53 = vmul.f32 %v1337_v16, %v1462_v32  ;;  %v750_v51 = vmul.f32 %v1337_v16, %v1467_v37 }
  0xc2   : > { %v1521_v9 = vsel %vm468_vm3, %v562_v61, %v563_v62  ;;  %v1526_v17 = vsel %vm468_vm3, %v563_v62, %v1898_v50  ;;  %v773_v62 = vrot.slane %v746_v45, 2  ;;  %v1556_v22 = vsel %vm326_vm4, %v770_v8, %v771_v47 }
  0xc3   : > { %v1546_v54 = vsel %vm326_vm4, %v766_v27, %v768_v30  ;;  %v1549_v61 = vsel %vm326_vm4, %v765_v7, %v766_v27  ;;  %v781_v10 = vrot.slane %v751_v48, 2  ;;  %v783_v6 = vrot.slane %v752_v53, 2 }
  0xc4   : > { %v1562_v7 = vmul.f32 %v1502_v56, %v1427_v2  ;;  %v1565_v27 = vsel %vm326_vm4, %v771_v47, %v773_v62  ;;  %v780_v16 = vrot.slane %v750_v51, 2  ;;  %v303_v30 = vmul.f32 %v1357_v25, %v1427_v2 }
  0xc5   : > { %v327_v45 = vrot.slane %v302_v59, 2  ;;  %v306_v8 = vmul.f32 %v1357_v25, %v1420_v63  ;;  %v307_v47 = vmul.f32 %v1357_v25, %v1422_v0  ;;  %v332_v62 = vrot.slane %v305_v3, 2 }
  0xc6   : > { %v1577_v48 = vsel %vm326_vm4, %v780_v16, %v781_v10  ;;  %v328_v53 = vrot.slane %v303_v30, 2  ;;  %v669_v51 = vmul.f32 %v1326_v11, %v1431_v4  ;;  %v311_v59 = vmul.f32 %v1357_v25, %v1467_v37 }
  0xc7   : > { %571 = vrot.lane.b32.xlu0 %v550_v12, %s1194_s25  ;;  %v258_v12 = vmul.f32 %v1362_v31, %v1407_v57  ;;  %v312_v50 = vmul.f32 %v1357_v25, %v1469_v39  ;;  %v383_v26 = vrot.slane %v1562_v7, 7  ;;  %v261_v16 = vmul.f32 %v1362_v31, %v1420_v63 }
  0xc8   : > { %647 = vrot.lane.b32.xlu2 %v624_v46, %s1193_s19  ;;  %693 = vrot.lane.b32.xlu1 %v668_v24, %s1193_s19  ;;  %v1570_v24 = vsel %vm326_vm4, %v781_v10, %v783_v6  ;;  %v260_v46 = vmul.f32 %v1362_v31, %v1402_v55  ;;  %v333_v6 = vrot.slane %v306_v8, 2  ;;  %v329_v10 = vsel %vm326_vm4, %v327_v45, %v328_v53 }
  0xc9   : > { %v335_v30 = vrot.slane %v307_v47, 2  ;;  %v1591_v14 = vadd.f32 %v329_v10, %v258_v12  ;;  %v342_v11 = vrot.slane %v311_v59, 2  ;;  %v343_v8 = vrot.slane %v312_v50, 2 }
  0xca   : > { %v334_v3 = vsel %vm326_vm4, %v332_v62, %v333_v6  ;;  %v264_v7 = vmul.f32 %v1362_v31, %v1467_v37  ;;  %v304_v45 = vmul.f32 %v1357_v25, %v1431_v4  ;;  %v368_v47 = vmul.f32 %v1502_v56, %v1420_v63 }
  0xcb   : > { %v336_v49 = vsel %vm326_vm4, %v333_v6, %v335_v30  ;;  %v1598_v44 = vadd.f32 %v334_v3, %v260_v46  ;;  %v344_v50 = vsel %vm326_vm4, %v342_v11, %v343_v8  ;;  %v313_v46 = vmul.f32 %v1357_v25, %v1462_v32 }
  0xcc   : > { %v1606_v12 = vadd.f32 %v336_v49, %v261_v16  ;;  %v1609_v5 = vadd.f32 %v344_v50, %v264_v7  ;;  %v365_v62 = vmul.f32 %v1502_v56, %v1407_v57  ;;  %v265_v10 = vmul.f32 %v1362_v31, %v1469_v39 }
  0xcd   : > { %v345_v6 = vrot.slane %v313_v46, 2  ;;  %v386_v25 = vrot.slane %v368_v47, 7  ;;  %v1911_v11 = vrot.slane %v1347_v20, 1  ;;  %v372_v20 = vmul.f32 %v1502_v56, %v1469_v39 }
  0xce   : > { %v382_v30 = vrot.slane %v365_v62, 7  ;;  %v369_v50 = vmul.f32 %v1502_v56, %v1328_v13  ;;  %v443_v62 = vstv %s991_s26 }
  0xcf   : > { %577 = vrot.lane.b32.xlu0 %v1910_v52, %s1194_s25  ;;  %v330_v52 = vrot.slane %v304_v45, 2  ;;  %v346_v16 = vsel %vm326_vm4, %v343_v8, %v345_v6  ;;  %v1912_v45 = vrot.slane %v1473_v40, 1  ;;  %v448_v40 = vmul.f32 %v443_v62, %v1420_v63 }
  0xd0   : > { %695 = vrot.lane.b32.xlu2 %v669_v51, %s1193_s19  ;;  %398 = vrot.lane.b32.xlu1 %v383_v26, %s1194_s25  ;;  %v259_v51 = vmul.f32 %v1362_v31, %v1427_v2  ;;  %v1625_v3 = vadd.f32 %v346_v16, %v265_v10  ;;  %v367_v31 = vmul.f32 %v1502_v56, %v1402_v55  ;;  %v388_v46 = vrot.slane %v369_v50, 7 }
  0xd1   : > { %v331_v49 = vsel %vm326_vm4, %v328_v53, %v330_v52  ;;  %v370_v53 = vmul.f32 %v1502_v56, %v1343_v19  ;;  %v392_v52 = vrot.slane %v372_v20, 7  ;;  %v384_v47 = vsel %vm381_vm5, %v382_v30, %v383_v26 }
  0xd2   : > { %v1620_v59 = vadd.f32 %v331_v49, %v259_v51  ;;  %v385_v8 = vrot.slane %v367_v31, 7  ;;  %v447_v51 = vmul.f32 %v443_v62, %v1402_v55  ;;  %v371_v49 = vmul.f32 %v1502_v56, %v1467_v37 }
  0xd3   : > { %v389_v7 = vrot.slane %v370_v53, 7  ;;  %v475_v6 = vrot.slane %v448_v40, 1  ;;  %v452_v53 = vmul.f32 %v443_v62, %v1341_v18  ;;  %v445_v31 = vmul.f32 %v443_v62, %v1427_v2 }
  0xd4   : > { %v474_v10 = vrot.slane %v447_v51, 1  ;;  %v391_v16 = vrot.slane %v371_v49, 7  ;;  %v444_v56 = vmul.f32 %v443_v62, %v1407_v57  ;;  %v449_v51 = vmul.f32 %v443_v62, %v1422_v0 }
  0xd5   : > { %v482_v20 = vrot.slane %v452_v53, 1  ;;  %v470_v50 = vrot.slane %v445_v31, 1 }
  0xd6   : > { %v476_v26 = vsel %vm468_vm3, %v474_v10, %v475_v6  ;;  %v477_v49 = vrot.slane %v449_v51, 1  ;;  %v393_v10 = vsel %vm381_vm5, %v391_v16, %v392_v52 }
  0xd7   : > { %583 = vrot.lane.b32.xlu0 %v1911_v11, %s1194_s25  ;;  %v387_v11 = vsel %vm381_vm5, %v385_v8, %v386_v25 }
  0xd8   : > { %404 = vrot.lane.b32.xlu1 %v386_v25, %s1194_s25  ;;  %394 = vrot.lane.b32.xlu2 %v382_v30, %s1194_s25  ;;  %v451_v30 = vmul.f32 %v443_v62, %v1343_v19  ;;  %v469_v25 = vrot.slane %v444_v56, 1 }
  0xda   : > { %v471_v40 = vsel %vm468_vm3, %v469_v25, %v470_v50 }
  0xdf   : > { %589 = vrot.lane.b32.xlu0 %v1912_v45, %s1194_s25  ;;  %v480_v45 = vrot.slane %v451_v30, 1 }
  0xe0   : > { %410 = vrot.lane.b32.xlu1 %v389_v7, %s1194_s25  ;;  %400 = vrot.lane.b32.xlu2 %v385_v8, %s1194_s25  ;;  %v390_v8 = vsel %vm381_vm5, %v388_v46, %v389_v7  ;;  %v453_v7 = vmul.f32 %v443_v62, %v1467_v37 }
  0xe2   : > { %v484_v53 = vrot.slane %v453_v7, 1 }
  0xe7   : > { %396 = vrot.lane.b32.xlu0 %v384_v47, %s1194_s25  ;;  %v483_v47 = vsel %vm468_vm3, %v480_v45, %v482_v20  ;;  %v455_v20 = vmul.f32 %v443_v62, %v1462_v32 }
  0xe8   : > { %416 = vrot.lane.b32.xlu1 %v392_v52, %s1194_s25  ;;  %406 = vrot.lane.b32.xlu2 %v388_v46, %s1194_s25  ;;  %v454_v46 = vmul.f32 %v443_v62, %v1469_v39 }
  0xe9   : > { %v487_v25 = vrot.slane %v455_v20, 1 }
  0xea   : > { %v485_v31 = vrot.slane %v454_v46, 1 }
  0xef   : > { %402 = vrot.lane.b32.xlu0 %v387_v11, %s1194_s25  ;;  %v446_v11 = vmul.f32 %v443_v62, %v1431_v4 }
  0xf0   : > { %493 = vrot.lane.b32.xlu1 %v476_v26, %s1194_s25  ;;  %412 = vrot.lane.b32.xlu2 %v391_v16, %s1194_s25  ;;  %v478_v26 = vsel %vm468_vm3, %v475_v6, %v477_v49  ;;  %v450_v16 = vmul.f32 %v443_v62, %v1328_v13  ;;  %v486_v6 = vsel %vm468_vm3, %v484_v53, %v485_v31 }
  0xf1   : > { %v472_v30 = vrot.slane %v446_v11, 1 }
  0xf2   : > { %v479_v56 = vrot.slane %v450_v16, 1 }
  0xf3   : > { %v473_v52 = vsel %vm468_vm3, %v470_v50, %v472_v30 }
  0xf7   : > { %408 = vrot.lane.b32.xlu0 %v390_v8, %s1194_s25 }
  0xf8   : > { %499 = vrot.lane.b32.xlu1 %v483_v47, %s1194_s25  ;;  %489 = vrot.lane.b32.xlu2 %v471_v40, %s1194_s25 }
  0xff   : > { %414 = vrot.lane.b32.xlu0 %v393_v10, %s1194_s25 }
 0x100   : > { %567 = vrot.lane.b32.xlu1 %v1465_v36, %s1194_s25  ;;  %495 = vrot.lane.b32.xlu2 %v478_v26, %s1194_s25  ;;  %v481_v36 = vsel %vm468_vm3, %v479_v56, %v480_v45 }
 0x107   : > { %491 = vrot.lane.b32.xlu0 %v473_v52, %s1194_s25 }
 0x108   : > { %573 = vrot.lane.b32.xlu1 %v1476_v41, %s1194_s25  ;;  %501 = vrot.lane.b32.xlu2 %v486_v6, %s1194_s25  ;;  %v488_v41 = vsel %vm468_vm3, %v485_v31, %v487_v25 }
 0x10f   : > { %497 = vrot.lane.b32.xlu0 %v481_v36, %s1194_s25 }
 0x110   : > { %579 = vrot.lane.b32.xlu1 %v1367_v33, %s1194_s25  ;;  %569 = vrot.lane.b32.xlu2 %v1479_v42, %s1194_s25 }
 0x112   : > { %v1692_v50 = vpop.permute.xlu2 %635 }
 0x117   : > { %503 = vrot.lane.b32.xlu0 %v488_v41, %s1194_s25 }
 0x118   : > { %585 = vrot.lane.b32.xlu1 %v1521_v9, %s1194_s25  ;;  %575 = vrot.lane.b32.xlu2 %v1484_v43, %s1194_s25 }
 0x11a   : > { %v1700_v62 = vpop.permute.xlu2 %641 }
 0x11f   : > { %697 = vrot.lane.b32.xlu0 %v1418_v60, %s1193_s19 }
 0x120   : > { %699 = vrot.lane.b32.xlu1 %v1454_v28, %s1193_s19  ;;  %581 = vrot.lane.b32.xlu2 %v1372_v34, %s1194_s25  ;;  %v1720_v34 = vstv %s988_s29 }
 0x121   : > { %v1708_v33 = vpop.permute.xlu0 %637  ;;  %v277_v16 = vmul.f32 %v1720_v34, %v1427_v2  ;;  %v287_v6 = vmul.f32 %v1720_v34, %v1462_v32 }
 0x122   : > { %v1710_v42 = vpop.permute.xlu2 %647  ;;  %v634_v45 = vpop.permute.xlu1 %633 }
 0x127   : > { %703 = vrot.lane.b32.xlu0 %v1335_v15, %s1193_s19 }
 0x128   : > { %705 = vrot.lane.b32.xlu1 %v1353_v23, %s1193_s19  ;;  %587 = vrot.lane.b32.xlu2 %v1526_v17, %s1194_s25  ;;  %v276_v23 = vmul.f32 %v1720_v34, %v1407_v57 }
 0x129   : > { %v1718_v60 = vpop.permute.xlu0 %643 }
 0x12a   : > { %v696_v28 = vpop.permute.xlu2 %695  ;;  %v640_v43 = vpop.permute.xlu1 %639 }
 0x12f   : > { %709 = vrot.lane.b32.xlu0 %v1512_v1, %s1193_s19 }
 0x130   : > { %711 = vrot.lane.b32.xlu1 %v1506_v58, %s1193_s19  ;;  %701 = vrot.lane.b32.xlu2 %v1458_v29, %s1193_s19  ;;  %v279_v29 = vmul.f32 %v1720_v34, %v1402_v55  ;;  %v282_v55 = vmul.f32 %v1720_v34, %v1328_v13  ;;  %v281_v13 = vmul.f32 %v1720_v34, %v1422_v0 }
 0x131   : > { %v1728_v15 = vpop.permute.xlu0 %691 }
 0x132   : > { %v646_v9 = vpop.permute.xlu1 %645  ;;  %v395_v17 = vpop.permute.xlu2 %394 }
 0x133   : > { %v1732_v8 = vadd.f32 %v395_v17, %v276_v23 }
 0x137   : > { %785 = vrot.lane.b32.xlu0 %v1549_v61, %s1193_s19 }
 0x138   : > { %787 = vrot.lane.b32.xlu1 %v1546_v54, %s1193_s19  ;;  %707 = vrot.lane.b32.xlu2 %v1376_v35, %s1193_s19  ;;  %v278_v35 = vmul.f32 %v1720_v34, %v1431_v4  ;;  %v285_v4 = vmul.f32 %v1720_v34, %v1467_v37 }
 0x139   : > { %v572_v58 = vpop.permute.xlu0 %571 }
 0x13a   : > { %v694_v1 = vpop.permute.xlu1 %693  ;;  %v401_v47 = vpop.permute.xlu2 %400 }
 0x13b   : > { %v1742_v57 = vadd.f32 %v401_v47, %v279_v29 }
 0x13f   : > { %791 = vrot.lane.b32.xlu0 %v1565_v27, %s1193_s19 }
 0x140   : > { %793 = vrot.lane.b32.xlu1 %v1379_v38, %s1193_s19  ;;  %713 = vrot.lane.b32.xlu2 %v1530_v21, %s1193_s19 }
 0x141   : > { %v578_v54 = vpop.permute.xlu0 %577 }
 0x142   : > { %v399_v61 = vpop.permute.xlu1 %398  ;;  %v407_v40 = vpop.permute.xlu2 %406 }
 0x143   : > { %v432_v51 = vadd.f32 %v399_v61, %v278_v35  ;;  %v1754_v49 = vadd.f32 %v407_v40, %v282_v55 }
 0x145   : > { %v605_v10 = vadd.f32 %v572_v58, %v432_v51 }
 0x147   : > { %v729_v27 = vadd.f32 %v696_v28, %v605_v10  ;;  %797 = vrot.lane.b32.xlu0 %v1577_v48, %s1193_s19  ;;  %v1913_v48 = vld [vmem:[#allocation12_spill] sm:$0xff] }
 0x148   : > { %799 = vrot.lane.b32.xlu1 %v1570_v24, %s1193_s19  ;;  %789 = vrot.lane.b32.xlu2 %v1556_v22, %s1193_s19  ;;  %v284_v22 = vmul.f32 %v1720_v34, %v1341_v18 }
 0x149   : > { %v584_v38 = vpop.permute.xlu0 %583  ;;  %v832_v51 = vrot.slane %v729_v27, 1 }
 0x14a   : > { %v405_v21 = vpop.permute.xlu1 %404  ;;  %v413_v11 = vpop.permute.xlu2 %412 }
 0x14b   : > { %v435_v26 = vadd.f32 %v405_v21, %v281_v13  ;;  %v1766_v7 = vadd.f32 %v413_v11, %v285_v4 }
 0x14d   : > { %v608_v46 = vadd.f32 %v578_v54, %v435_v26 }
 0x150   : > { %795 = vrot.lane.b32.xlu2 %v1913_v48, %s1193_s19 }
 0x151   : > { %v590_v24 = vpop.permute.xlu0 %589 }
 0x152   : > { %v411_v30 = vpop.permute.xlu1 %410  ;;  %v490_v53 = vpop.permute.xlu2 %489 }
 0x153   : > { %v438_v31 = vadd.f32 %v411_v30, %v284_v22  ;;  %v513_v0 = vadd.f32 %v490_v53, %v1591_v14 }
 0x155   : > { %v1773_v52 = vadd.f32 %v584_v38, %v438_v31  ;;  %v1775_v37 = vadd.f32 %v634_v45, %v513_v0 }
 0x159   : > { %v397_v56 = vpop.permute.xlu0 %396 }
 0x15a   : > { %v417_v36 = vpop.permute.xlu1 %416  ;;  %v496_v20 = vpop.permute.xlu2 %495  ;;  %v431_v25 = vadd.f32 %v397_v56, %v277_v16 }
 0x15b   : > { %v441_v18 = vadd.f32 %v417_v36, %v287_v6  ;;  %v516_v41 = vadd.f32 %v496_v20, %v1606_v12  ;;  %v1914_v12 = vld [vmem:[#allocation13_spill] sm:$0xff] }
 0x15d   : > { %v1782_v28 = vadd.f32 %v590_v24, %v441_v18  ;;  %v1784_v14 = vadd.f32 %v640_v43, %v516_v41  ;;  %v283_v41 = vmul.f32 %v1720_v34, %v1343_v19 }
 0x161   : > { %v403_v23 = vpop.permute.xlu0 %402 }
 0x162   : > { %v494_v45 = vpop.permute.xlu1 %493  ;;  %v502_v17 = vpop.permute.xlu2 %501 }
 0x163   : > { %v515_v58 = vadd.f32 %v494_v45, %v1598_v44  ;;  %v519_v2 = vadd.f32 %v502_v17, %v1609_v5  ;;  %v286_v44 = vmul.f32 %v1720_v34, %v1469_v39 }
 0x165   : > { %v1789_v32 = vadd.f32 %v1708_v33, %v515_v58  ;;  %v1791_v29 = vadd.f32 %v646_v9, %v519_v2 }
 0x169   : > { %v409_v47 = vpop.permute.xlu0 %408 }
 0x16a   : > { %v500_v54 = vpop.permute.xlu1 %499  ;;  %v570_v35 = vpop.permute.xlu2 %569  ;;  %v437_v58 = vadd.f32 %v409_v47, %v283_v41 }
 0x16b   : > { %v518_v55 = vadd.f32 %v500_v54, %v1914_v12  ;;  %v604_v61 = vadd.f32 %v570_v35, %v431_v25 }
 0x16d   : > { %v728_v43 = vadd.f32 %v694_v1, %v604_v61  ;;  %v1795_v40 = vadd.f32 %v1718_v60, %v518_v55 }
 0x16f   : > { %v830_v10 = vrot.slane %v728_v43, 1 }
 0x171   : > { %v415_v5 = vpop.permute.xlu0 %414  ;;  %v1800_v33 = vsel %vm468_vm3, %v830_v10, %v832_v51 }
 0x172   : > { %v568_v9 = vpop.permute.xlu1 %567  ;;  %v576_v38 = vpop.permute.xlu2 %575  ;;  %v440_v13 = vadd.f32 %v415_v5, %v286_v44 }
 0x173   : > { %v603_v4 = vadd.f32 %v568_v9, %v1732_v8  ;;  %v280_v8 = vmul.f32 %v1720_v34, %v1420_v63 }
 0x175   : > { %v727_v21 = vadd.f32 %v1728_v15, %v603_v4  ;;  %v434_v31 = vadd.f32 %v403_v23, %v280_v8 }
 0x177   : > { %v829_v1 = vrot.slane %v727_v21, 1  ;;  %v607_v0 = vadd.f32 %v576_v38, %v434_v31 }
 0x179   : > { %v492_v11 = vpop.permute.xlu0 %491  ;;  %v1805_v60 = vsel %vm468_vm3, %v829_v1, %v830_v10 }
 0x17a   : > { %v574_v27 = vpop.permute.xlu1 %573  ;;  %v582_v26 = vpop.permute.xlu2 %581 }
 0x17b   : > { %v606_v15 = vadd.f32 %v574_v27, %v1742_v57  ;;  %v610_v23 = vadd.f32 %v582_v26, %v437_v58  ;;  %v514_v27 = vadd.f32 %v492_v11, %v1620_v59 }
 0x181   : > { %v1807_v48 = vpop.permute.xlu0 %497 }
 0x182   : > { %v580_v39 = vpop.permute.xlu1 %579  ;;  %v588_v24 = vpop.permute.xlu2 %587 }
 0x183   : > { %v609_v57 = vadd.f32 %v580_v39, %v1754_v49  ;;  %v613_v44 = vadd.f32 %v588_v24, %v440_v13 }
 0x189   : > { %v1809_v22 = vpop.permute.xlu0 %503 }
 0x18a   : > { %v586_v30 = vpop.permute.xlu1 %585  ;;  %v702_v53 = vpop.permute.xlu2 %701 }
 0x18b   : > { %v732_v16 = vadd.f32 %v702_v53, %v608_v46  ;;  %v612_v10 = vadd.f32 %v586_v30, %v1766_v7 }
 0x18d   : > { %v837_v45 = vrot.slane %v732_v16, 1 }
 0x191   : > { %v698_v6 = vpop.permute.xlu0 %697 }
 0x192   : > { %v700_v56 = vpop.permute.xlu1 %699  ;;  %v708_v36 = vpop.permute.xlu2 %707  ;;  %v730_v20 = vadd.f32 %v698_v6, %v606_v15  ;;  %v1915_v15 = vld [vmem:[#allocation14_spill] sm:$0xff] }
 0x193   : > { %v731_v25 = vadd.f32 %v700_v56, %v607_v0  ;;  %v735_v46 = vadd.f32 %v708_v36, %v1773_v52  ;;  %v517_v0 = vadd.f32 %v1807_v48, %v1915_v15 }
 0x194   : > { %v834_v18 = vrot.slane %v730_v20, 1 }
 0x195   : > { %v835_v17 = vrot.slane %v731_v25, 1  ;;  %v842_v51 = vrot.slane %v735_v46, 1 }
 0x197   : > { %v836_v2 = vsel %vm468_vm3, %v834_v18, %v835_v17  ;;  %v838_v63 = vsel %vm468_vm3, %v835_v17, %v837_v45 }
 0x199   : > { %v704_v54 = vpop.permute.xlu0 %703 }
 0x19a   : > { %v706_v35 = vpop.permute.xlu1 %705  ;;  %v714_v12 = vpop.permute.xlu2 %713  ;;  %v733_v55 = vadd.f32 %v704_v54, %v609_v57 }
 0x19b   : > { %v734_v61 = vadd.f32 %v706_v35, %v610_v23  ;;  %v738_v49 = vadd.f32 %v714_v12, %v1782_v28 }
 0x19c   : > { %v839_v43 = vrot.slane %v733_v55, 1 }
 0x19d   : > { %v840_v19 = vrot.slane %v734_v61, 1  ;;  %v847_v26 = vrot.slane %v738_v49, 1 }
 0x19f   : > { %v843_v34 = vsel %vm468_vm3, %v840_v19, %v842_v51  ;;  %v841_v47 = vsel %vm468_vm3, %v839_v43, %v840_v19 }
 0x1a1   : > { %v710_v5 = vpop.permute.xlu0 %709 }
 0x1a2   : > { %v712_v52 = vpop.permute.xlu1 %711  ;;  %v790_v9 = vpop.permute.xlu2 %789  ;;  %v736_v38 = vadd.f32 %v710_v5, %v612_v10 }
 0x1a3   : > { %v737_v4 = vadd.f32 %v712_v52, %v613_v44  ;;  %v811_v21 = vadd.f32 %v790_v9, %v1789_v32  ;;  %v658_v32 = vadd.f32 %v1692_v50, %v514_v27  ;;  %v661_v50 = vadd.f32 %v1700_v62, %v517_v0 }
 0x1a4   : > { %v844_v1 = vrot.slane %v736_v38, 1 }
 0x1a5   : > { %v845_v39 = vrot.slane %v737_v4, 1  ;;  %v859_v53 = vadd.f32 %v836_v2, %v811_v21 }
 0x1a7   : > { %868 = vst.msk [vmem:[%s1828_s30 + $0x10] sm:$0xff] %vm865_vm6, %v859_v53  ;;  %v848_v7 = vsel %vm468_vm3, %v845_v39, %v847_v26  ;;  %v846_v28 = vsel %vm468_vm3, %v844_v1, %v845_v39 }
 0x1a9   : > { %v786_v13 = vpop.permute.xlu0 %785 }
 0x1aa   : > { %v788_v59 = vpop.permute.xlu1 %787  ;;  %v796_v11 = vpop.permute.xlu2 %795  ;;  %v809_v24 = vadd.f32 %v786_v13, %v1775_v37 }
 0x1ab   : > { %v810_v30 = vadd.f32 %v788_v59, %v658_v32  ;;  %v814_v8 = vadd.f32 %v796_v11, %v1795_v40 }
 0x1ac   : > { %v857_v31 = vadd.f32 %v1805_v60, %v809_v24 }
 0x1ad   : > { %v858_v16 = vadd.f32 %v1800_v33, %v810_v30  ;;  %v862_v6 = vadd.f32 %v843_v34, %v814_v8  ;;  %v520_v33 = vadd.f32 %v1809_v22, %v1625_v3 }
 0x1ae   : > { %866 = vst.msk [vmem:[%s1828_s30] sm:$0xff] %vm865_vm6, %v857_v31 }
 0x1af   : > { %867 = vst.msk [vmem:[%s1828_s30 + $0x8] sm:$0xff] %vm865_vm6, %v858_v16  ;;  %v664_v62 = vadd.f32 %v1710_v42, %v520_v33 }
 0x1b0   : > { %871 = vst.msk [vmem:[%s1828_s30 + $0x28] sm:$0xff] %vm865_vm6, %v862_v6 }
 0x1b1   : > { %v792_v37 = vpop.permute.xlu0 %791 }
 0x1b2   : > { %v794_v40 = vpop.permute.xlu1 %793  ;;  %v812_v60 = vadd.f32 %v792_v37, %v1784_v14 }
 0x1b3   : > { %v813_v56 = vadd.f32 %v794_v40, %v661_v50 }
 0x1b4   : > { %v860_v48 = vadd.f32 %v838_v63, %v812_v60 }
 0x1b5   : > { %v861_v36 = vadd.f32 %v841_v47, %v813_v56 }
 0x1b6   : > { %869 = vst.msk [vmem:[%s1828_s30 + $0x18] sm:$0xff] %vm865_vm6, %v860_v48 }
 0x1b7   : > { %870 = vst.msk [vmem:[%s1828_s30 + $0x20] sm:$0xff] %vm865_vm6, %v861_v36 }
 0x1b9   : > { %v798_v14 = vpop.permute.xlu0 %797 }
 0x1ba   : > { %v800_v20 = vpop.permute.xlu1 %799  ;;  %v815_v3 = vadd.f32 %v798_v14, %v1791_v29 }
 0x1bb   : > { %v816_v22 = vadd.f32 %v800_v20, %v664_v62 }
 0x1bc   : > { %v863_v25 = vadd.f32 %v846_v28, %v815_v3 }
 0x1bd   : > { %v864_v18 = vadd.f32 %v848_v7, %v816_v22 }
 0x1be   : > { %872 = vst.msk [vmem:[%s1828_s30 + $0x30] sm:$0xff] %vm865_vm6, %v863_v25 }
 0x1bf   : > { %873 = vst.msk [vmem:[%s1828_s30 + $0x38] sm:$0xff] %vm865_vm6, %v864_v18 }
 0x1c0   : > { %1143 = shalt.err (!%p1140_p8)
}
 0x1c1   : > { %s1195_s4 = smov 128   ;;  %s1196_s24 = smov 8  }
 0x1c2   : > { %1012 = dma.vmem_to_hbm [thread:$0]  (%p1264_p11), %s889_s13, 1024, %s891_s28, %s875_s23, %s1195_s4, %s1195_s4, %s1196_s24  }
 0x1c3 PF: > { %s905_s25 = sand.u32 1, %s1174_s9   ;;  %p1916_p9 = scmp.ge.s32.totalorder %s1186_s12, 2 }
 0x1c4   : > { %s906_s26 = scalar_lea.sflag [#allocation5], %s905_s25 }
 0x1c5   : > { %p1023_p10 = pnand %p1916_p9, %p1268_p12 }
 0x1c7   : > { %p1024_p1 = pneg %p1023_p10 }
 0x1c9   : > { %1169 = dma.done.wait (%p1024_p1), %s906_s26, 1024  }
 0x1ca   : > { %1171 = vsyncadd (%p1024_p1), %s906_s26, 4294966272  ;;  %p16_p2 = scmp.ge.s32.totalorder %s1237_s15, 4   ;;  %s1917_s9 = smov %s1178_s10 }
 0x1cb   : > { %s1918_s10 = smov %s1182_s11  ;;  %s1919_s11 = smov %s1249_s18 }
 0x1cc   : > { %s1920_s12 = smov %s1237_s15  ;;  %18 = sbr.rel (!%p16_p2) target bundleno = 6 (0x6), region = 78 }
 0x1d1   :  { %912 = vsyncpa [#allocation4], 1 }
 0x1d2   :  { %914 = vsyncpa [#allocation4 + $0x1], 1 }
 0x1d3   :  { %915 = vsyncpa [#allocation5], 1 }
 0x1d4   :  { %917 = vsyncpa [#allocation5 + $0x1], 1 }
 0x1d5   :  { %918 = vsyncpa [#allocation6], 1 }
 0x1d6   :  { %920 = vsyncpa [#allocation6 + $0x1], 1 }

</bundles_post_ra>
